<compile_context>
chip_gen: v5e
topology: v5e:2x2
jax: 0.10.0
libtpu: 0.0.40
codegen_flags: <defaults>
</compile_context>

<pallas_src>
import math

import jax
import jax.numpy as jnp
from jax.experimental import pallas as pl
from jax.experimental.pallas import tpu as pltpu

LOG_STD_MAX = 0.0
LOG_STD_MIN = -6.0

LANE = 128


def _round_up(n, m):
    return ((n + m - 1) // m) * m


def actor_kernel(x_ref, w1_ref, b1_ref, w2_ref, b2_ref, wm_ref, bm_ref, mean_ref):
    # fc1 + relu (bf16 operands, f32 accumulation on the MXU)
    h1 = jnp.dot(x_ref[...], w1_ref[...], preferred_element_type=jnp.float32)
    h1 = jnp.maximum(h1 + b1_ref[...], 0.0)
    # fc2 + relu
    h2 = jnp.dot(h1.astype(jnp.bfloat16), w2_ref[...],
                 preferred_element_type=jnp.float32)
    h2 = jnp.maximum(h2 + b2_ref[...], 0.0)
    # fc_mean (lane-dense, 128-padded output)
    mean_ref[...] = (
        jnp.dot(h2.astype(jnp.bfloat16), wm_ref[...],
                preferred_element_type=jnp.float32)
        + bm_ref[...]
    )


def actor_forward(x, params, *, block_batch=512):
    """x: (B, obs_dim) float32. Returns (mean (B, act_dim), log_std (act_dim,))."""
    w1, b1, w2, b2, wm, bm, log_std_param = params
    B, obs_dim = x.shape
    hidden = w1.shape[1]
    act_dim = wm.shape[1]

    # ---- log_std head: pure function of the parameter, keep it out of the kernel
    log_std = LOG_STD_MIN + jax.nn.sigmoid(log_std_param) * (LOG_STD_MAX - LOG_STD_MIN)

    # ---- pad mean head to a lane-dense width (multiple of 128, zero columns) ----
    act_pad = _round_up(max(act_dim, LANE), LANE)
    wm_p = jnp.zeros((hidden, act_pad), jnp.float32).at[:, :act_dim].set(wm)
    bm_p = jnp.zeros((act_pad,), jnp.float32).at[:act_dim].set(bm)

    # ---- batch tiling (TB multiple of 16 for bf16 sublane packing) ----
    tb = _round_up(min(block_batch, _round_up(B, 16)), 16)
    b_pad = _round_up(B, tb)
    x_p = x if b_pad == B else jnp.pad(x, ((0, b_pad - B), (0, 0)))
    grid = (b_pad // tb,)

    # bf16 operands for the MXU (accumulation stays f32 inside the kernel)
    x_bf = x_p.astype(jnp.bfloat16)
    w1_bf = w1.astype(jnp.bfloat16)
    w2_bf = w2.astype(jnp.bfloat16)
    wm_bf = wm_p.astype(jnp.bfloat16)

    flops = 2 * b_pad * (obs_dim * hidden + hidden * hidden + hidden * act_pad)
    bytes_accessed = (
        b_pad * obs_dim * 2                                             # x (bf16)
        + b_pad * act_pad * 4                                           # mean (f32)
        + (obs_dim * hidden + hidden * hidden + hidden * act_pad) * 2   # weights (bf16)
        + (2 * hidden + act_pad) * 4                                    # biases (f32)
    )

    mean_padded = pl.pallas_call(
        actor_kernel,
        out_shape=jax.ShapeDtypeStruct((b_pad, act_pad), jnp.float32),
        grid=grid,
        in_specs=[
            pl.BlockSpec((tb, obs_dim), lambda i: (i, 0)),      # x tile (pipelined)
            pl.BlockSpec((obs_dim, hidden), lambda i: (0, 0)),  # W1 (VMEM-resident)
            pl.BlockSpec((1, hidden), lambda i: (0, 0)),        # b1
            pl.BlockSpec((hidden, hidden), lambda i: (0, 0)),   # W2
            pl.BlockSpec((1, hidden), lambda i: (0, 0)),        # b2
            pl.BlockSpec((hidden, act_pad), lambda i: (0, 0)),  # Wm (padded)
            pl.BlockSpec((1, act_pad), lambda i: (0, 0)),       # bm (padded)
        ],
        out_specs=pl.BlockSpec((tb, act_pad), lambda i: (i, 0)),
        compiler_params=pltpu.CompilerParams(
            dimension_semantics=("parallel",),
        ),
        cost_estimate=pl.CostEstimate(
            flops=flops, transcendentals=0, bytes_accessed=bytes_accessed
        ),
    )(
        x_bf,
        w1_bf, b1.reshape(1, -1),
        w2_bf, b2.reshape(1, -1),
        wm_bf, bm_p.reshape(1, -1),
    )

    mean = mean_padded[:B, :act_dim]
    return mean, log_std


def xavier_uniform(key, fan_in, fan_out):
    # matches torch.nn.init.xavier_uniform_ (gain=1); stored (in, out) so fwd is x @ W
    limit = math.sqrt(6.0 / (fan_in + fan_out))
    return jax.random.uniform(
        key, (fan_in, fan_out), dtype=jnp.float32, minval=-limit, maxval=limit
    )


def init_params(key, obs_dim, act_dim, hidden=256):
    k1, k2, k3 = jax.random.split(key, 3)
    w1 = xavier_uniform(k1, obs_dim, hidden)
    b1 = jnp.zeros((hidden,), jnp.float32)
    w2 = xavier_uniform(k2, hidden, hidden)
    b2 = jnp.zeros((hidden,), jnp.float32)
    wm = xavier_uniform(k3, hidden, act_dim)
    bm = jnp.zeros((act_dim,), jnp.float32)
    log_std_param = jnp.zeros((act_dim,), jnp.float32)
    return (w1, b1, w2, b2, wm, bm, log_std_param)


if __name__ == "__main__":
    key = jax.random.PRNGKey(0)
    k_param, k_x = jax.random.split(key)

    B, OBS_DIM, ACT_DIM = 8, 16, 8
    params = init_params(k_param, OBS_DIM, ACT_DIM)
    x = jax.random.normal(k_x, (B, OBS_DIM), dtype=jnp.float32)

    mean, log_std = jax.jit(actor_forward)(x, params)
    jax.block_until_ready((mean, log_std))

    # ---- references ----
    w1, b1, w2, b2, wm, bm, ls_p = params

    # full-f32 reference (semantics of the PyTorch module)
    h1_f = jnp.maximum(x @ w1 + b1, 0.0)
    h2_f = jnp.maximum(h1_f @ w2 + b2, 0.0)
    mean_f32_ref = h2_f @ wm + bm

    # bf16-operand / f32-accumulate reference (matches kernel arithmetic)
    xb = x.astype(jnp.bfloat16)
    h1_b = jnp.maximum(
        jnp.dot(xb, w1.astype(jnp.bfloat16), preferred_element_type=jnp.float32) + b1, 0.0)
    h2_b = jnp.maximum(
        jnp.dot(h1_b.astype(jnp.bfloat16), w2.astype(jnp.bfloat16),
                preferred_element_type=jnp.float32) + b2, 0.0)
    mean_bf16_ref = (
        jnp.dot(h2_b.astype(jnp.bfloat16), wm.astype(jnp.bfloat16),
                preferred_element_type=jnp.float32) + bm)

    log_std_ref = LOG_STD_MIN + jax.nn.sigmoid(ls_p) * (LOG_STD_MAX - LOG_STD_MIN)

    assert mean.shape == (B, ACT_DIM) and log_std.shape == (ACT_DIM,)
    assert jnp.allclose(mean, mean_bf16_ref, atol=2e-3, rtol=2e-3), "bf16-ref mismatch"
    assert jnp.allclose(mean, mean_f32_ref, atol=5e-2, rtol=5e-2), "f32-ref mismatch"
    assert jnp.allclose(log_std, log_std_ref, atol=1e-6, rtol=1e-6)

    print("KERNEL_OK")
</pallas_src>

<mosaic_0001>
module attributes {stable_mosaic.version = 11 : i64} {
  func.func @actor_kernel(%arg0: i32, %arg1: memref<16x16xbf16, #tpu.memory_space<vmem>>, %arg2: memref<16x256xbf16, #tpu.memory_space<vmem>>, %arg3: memref<1x256xf32, #tpu.memory_space<vmem>>, %arg4: memref<256x256xbf16, #tpu.memory_space<vmem>>, %arg5: memref<1x256xf32, #tpu.memory_space<vmem>>, %arg6: memref<256x128xbf16, #tpu.memory_space<vmem>>, %arg7: memref<1x128xf32, #tpu.memory_space<vmem>>, %arg8: memref<16x128xf32, #tpu.memory_space<vmem>>) attributes {dimension_semantics = [#tpu.dimension_semantics<parallel>], iteration_bounds = array<i64: 1>, scalar_prefetch = 0 : i64, scratch_operands = 0 : i64, tpu.core_type = #tpu.core_type<tc>, window_params = [{transform_indices = @transform_0, window_bounds = array<i64: 16, 16>}, {pipeline_mode = #tpu.pipeline_mode<synchronous>, transform_indices = @transform_1, window_bounds = array<i64: 16, 256>}, {pipeline_mode = #tpu.pipeline_mode<synchronous>, transform_indices = @transform_2, window_bounds = array<i64: 1, 256>}, {pipeline_mode = #tpu.pipeline_mode<synchronous>, transform_indices = @transform_3, window_bounds = array<i64: 256, 256>}, {pipeline_mode = #tpu.pipeline_mode<synchronous>, transform_indices = @transform_4, window_bounds = array<i64: 1, 256>}, {pipeline_mode = #tpu.pipeline_mode<synchronous>, transform_indices = @transform_5, window_bounds = array<i64: 256, 128>}, {pipeline_mode = #tpu.pipeline_mode<synchronous>, transform_indices = @transform_6, window_bounds = array<i64: 1, 128>}, {transform_indices = @transform_7, window_bounds = array<i64: 16, 128>}]} {
    %c0 = arith.constant 0 : index
    %c0_0 = arith.constant 0 : index
    %0 = vector.load %arg1[%c0, %c0_0] : memref<16x16xbf16, #tpu.memory_space<vmem>>, vector<16x16xbf16>
    %c0_1 = arith.constant 0 : index
    %c0_2 = arith.constant 0 : index
    %1 = vector.load %arg2[%c0_1, %c0_2] : memref<16x256xbf16, #tpu.memory_space<vmem>>, vector<16x256xbf16>
    %cst = arith.constant dense<0.000000e+00> : vector<16x256xf32>
    %2 = tpu.matmul %0, %1, %cst {dimension_numbers = #tpu.dot_dimension_numbers<[1], [0], [0], [1], [0, 0, 1, 1], [], []>} : vector<16x16xbf16>, vector<16x256xbf16>, vector<16x256xf32> -> vector<16x256xf32>
    %c0_3 = arith.constant 0 : index
    %c0_4 = arith.constant 0 : index
    %3 = vector.load %arg3[%c0_3, %c0_4] : memref<1x256xf32, #tpu.memory_space<vmem>>, vector<1x256xf32>
    %4 = vector.broadcast %3 : vector<1x256xf32> to vector<16x256xf32>
    %5 = arith.addf %2, %4 : vector<16x256xf32>
    %cst_5 = arith.constant 0.000000e+00 : f32
    %6 = vector.broadcast %cst_5 : f32 to vector<16x256xf32>
    %7 = arith.maximumf %5, %6 : vector<16x256xf32>
    %8 = arith.truncf %7 : vector<16x256xf32> to vector<16x256xbf16>
    %c0_6 = arith.constant 0 : index
    %c0_7 = arith.constant 0 : index
    %9 = vector.load %arg4[%c0_6, %c0_7] : memref<256x256xbf16, #tpu.memory_space<vmem>>, vector<256x256xbf16>
    %cst_8 = arith.constant dense<0.000000e+00> : vector<16x256xf32>
    %10 = tpu.matmul %8, %9, %cst_8 {dimension_numbers = #tpu.dot_dimension_numbers<[1], [0], [0], [1], [0, 0, 1, 1], [], []>} : vector<16x256xbf16>, vector<256x256xbf16>, vector<16x256xf32> -> vector<16x256xf32>
    %c0_9 = arith.constant 0 : index
    %c0_10 = arith.constant 0 : index
    %11 = vector.load %arg5[%c0_9, %c0_10] : memref<1x256xf32, #tpu.memory_space<vmem>>, vector<1x256xf32>
    %12 = vector.broadcast %11 : vector<1x256xf32> to vector<16x256xf32>
    %13 = arith.addf %10, %12 : vector<16x256xf32>
    %cst_11 = arith.constant 0.000000e+00 : f32
    %14 = vector.broadcast %cst_11 : f32 to vector<16x256xf32>
    %15 = arith.maximumf %13, %14 : vector<16x256xf32>
    %16 = arith.truncf %15 : vector<16x256xf32> to vector<16x256xbf16>
    %c0_12 = arith.constant 0 : index
    %c0_13 = arith.constant 0 : index
    %17 = vector.load %arg6[%c0_12, %c0_13] : memref<256x128xbf16, #tpu.memory_space<vmem>>, vector<256x128xbf16>
    %cst_14 = arith.constant dense<0.000000e+00> : vector<16x128xf32>
    %18 = tpu.matmul %16, %17, %cst_14 {dimension_numbers = #tpu.dot_dimension_numbers<[1], [0], [0], [1], [0, 0, 1, 1], [], []>} : vector<16x256xbf16>, vector<256x128xbf16>, vector<16x128xf32> -> vector<16x128xf32>
    %c0_15 = arith.constant 0 : index
    %c0_16 = arith.constant 0 : index
    %19 = vector.load %arg7[%c0_15, %c0_16] : memref<1x128xf32, #tpu.memory_space<vmem>>, vector<1x128xf32>
    %20 = vector.broadcast %19 : vector<1x128xf32> to vector<16x128xf32>
    %21 = arith.addf %18, %20 : vector<16x128xf32>
    %c0_17 = arith.constant 0 : index
    %c0_18 = arith.constant 0 : index
    %22 = vector.load %arg8[%c0_17, %c0_18] : memref<16x128xf32, #tpu.memory_space<vmem>>, vector<16x128xf32>
    tpu.vector_store %arg8[%c0_17, %c0_18], %21 {strides = array<i32>} : memref<16x128xf32, #tpu.memory_space<vmem>>, vector<16x128xf32>,
    return
  }
  func.func @transform_0(%arg0: i32) -> (i32, i32) {
    %c0_i32 = arith.constant 0 : i32
    %c0_i32_0 = arith.constant 0 : i32
    return %arg0, %c0_i32 : i32, i32
  }
  func.func @transform_1(%arg0: i32) -> (i32, i32) {
    %c0_i32 = arith.constant 0 : i32
    %c0_i32_0 = arith.constant 0 : i32
    %c0_i32_1 = arith.constant 0 : i32
    return %c0_i32, %c0_i32_0 : i32, i32
  }
  func.func @transform_2(%arg0: i32) -> (i32, i32) {
    %c0_i32 = arith.constant 0 : i32
    %c0_i32_0 = arith.constant 0 : i32
    %c0_i32_1 = arith.constant 0 : i32
    return %c0_i32, %c0_i32_0 : i32, i32
  }
  func.func @transform_3(%arg0: i32) -> (i32, i32) {
    %c0_i32 = arith.constant 0 : i32
    %c0_i32_0 = arith.constant 0 : i32
    %c0_i32_1 = arith.constant 0 : i32
    return %c0_i32, %c0_i32_0 : i32, i32
  }
  func.func @transform_4(%arg0: i32) -> (i32, i32) {
    %c0_i32 = arith.constant 0 : i32
    %c0_i32_0 = arith.constant 0 : i32
    %c0_i32_1 = arith.constant 0 : i32
    return %c0_i32, %c0_i32_0 : i32, i32
  }
  func.func @transform_5(%arg0: i32) -> (i32, i32) {
    %c0_i32 = arith.constant 0 : i32
    %c0_i32_0 = arith.constant 0 : i32
    %c0_i32_1 = arith.constant 0 : i32
    return %c0_i32, %c0_i32_0 : i32, i32
  }
  func.func @transform_6(%arg0: i32) -> (i32, i32) {
    %c0_i32 = arith.constant 0 : i32
    %c0_i32_0 = arith.constant 0 : i32
    %c0_i32_1 = arith.constant 0 : i32
    return %c0_i32, %c0_i32_0 : i32, i32
  }
  func.func @transform_7(%arg0: i32) -> (i32, i32) {
    %c0_i32 = arith.constant 0 : i32
    %c0_i32_0 = arith.constant 0 : i32
    return %arg0, %c0_i32 : i32, i32
  }
}

</mosaic_0001>

<bundles_post_ra>
// kernel: actor_forward.1
= control target key start
LH: loop header
LB: loop body
LE: loop exit
PB: predicated region body
PF: predicated region fallthrough
CT: control target
= control target key end

     0   :  { %vm52_vm0 = vcmask 130048   ;;  %s1086_s1 = inlined_call_operand.vmem [shape: bf16[16,256], index: 1, kind: input, shape index: {}]   ;;  %s1087_s0 = inlined_call_operand.vmem [shape: bf16[16,16], index: 0, kind: input, shape index: {}]   ;;  %s1088_s3 = inlined_call_operand.vmem [shape: bf16[256,256], index: 3, kind: input, shape index: {}]   ;;  %s1089_s5 = inlined_call_operand.vmem [shape: bf16[256,128], index: 5, kind: input, shape index: {}]   ;;  %s1090_s2 = inlined_call_operand.vmem [shape: f32[1,256], index: 2, kind: input, shape index: {}]   ;;  %s1091_s4 = inlined_call_operand.vmem [shape: f32[1,256], index: 4, kind: input, shape index: {}]   ;;  %s1092_s6 = inlined_call_operand.vmem [shape: f32[1,128], index: 6, kind: input, shape index: {}]   ;;  %s1093_s7 = inlined_call_operand.vmem [shape: f32[16,128], index: 7, kind: output, shape index: {}]  }
   0x1   :  { %v522_v0 = vld [vmem:[%s1086_s1] sm:$0xf]  ;;  %v724_v1 = vld [vmem:[%s1086_s1 + $0x4] sm:$0xf0]  ;;  %v723_v2 = vld [vmem:[%s1086_s1 + $0x4] sm:$0xf] }
   0x2   :  { %v523_v3 = vor.u32 %v724_v1, %v522_v0  ;;  %v524_v4 = vld [vmem:[%s1086_s1 + $0x8] sm:$0xf0]  ;;  %v722_v5 = vld [vmem:[%s1087_s0] sm:$0xff]  ;;  %v588_v6 = vld [vmem:[%s1088_s3 + $0x70] sm:$0xf] }
   0x3   :  { %v527_v7 = vor.u32 %v723_v2, %v524_v4  ;;  %v740_v8 = vld [vmem:[%s1088_s3 + $0x74] sm:$0xf0]  ;;  %v652_v9 = vld [vmem:[%s1088_s3 + $0xf0] sm:$0xf]  ;;  %v739_v13 = vld [vmem:[%s1088_s3 + $0x74] sm:$0xf] }
   0x4   :  { %v756_v10 = vld [vmem:[%s1088_s3 + $0xf4] sm:$0xf0]  ;;  %63 = vmatpush.bf16.msra.mxu0 %v523_v3  ;;  %v589_v11 = vor.u32 %v740_v8, %v588_v6  ;;  %v590_v14 = vld [vmem:[%s1088_s3 + $0x78] sm:$0xf0]  ;;  %v755_v15 = vld [vmem:[%s1088_s3 + $0xf4] sm:$0xf] }
   0x5   :  { %v653_v12 = vor.u32 %v756_v10, %v652_v9  ;;  %77 = vmatpush.bf16.msra.mxu1 %v527_v7  ;;  %v593_v16 = vor.u32 %v739_v13, %v590_v14  ;;  %v654_v17 = vld [vmem:[%s1088_s3 + $0xf8] sm:$0xf0]  ;;  %v580_v18 = vld [vmem:[%s1088_s3 + $0x60] sm:$0xf]  ;;  %v738_v19 = vld [vmem:[%s1088_s3 + $0x64] sm:$0xf0] }
   0x6   :  { %288 = vmatpush.bf16.msra.mxu2 %v589_v11  ;;  %v657_v20 = vor.u32 %v755_v15, %v654_v17  ;;  %v581_v21 = vor.u32 %v738_v19, %v580_v18  ;;  %v644_v22 = vld [vmem:[%s1088_s3 + $0xe0] sm:$0xf]  ;;  %v754_v23 = vld [vmem:[%s1088_s3 + $0xe4] sm:$0xf0]  ;;  %v737_v24 = vld [vmem:[%s1088_s3 + $0x64] sm:$0xf] }
   0x7   :  { %302 = vmatpush.bf16.msra.mxu3 %v653_v12  ;;  %528 = vmatmul.msk.bf16.vlgmr.msra.gmra.mxu0 %vm52_vm0, %v722_v5  ;;  %v645_v25 = vor.u32 %v754_v23, %v644_v22  ;;  %v582_v26 = vld [vmem:[%s1088_s3 + $0x68] sm:$0xf0]  ;;  %v753_v27 = vld [vmem:[%s1088_s3 + $0xe4] sm:$0xf]  ;;  %v572_v30 = vld [vmem:[%s1088_s3 + $0x50] sm:$0xf] }
   0x8   :  { %v646_v28 = vld [vmem:[%s1088_s3 + $0xe8] sm:$0xf0]  ;;  %529 = vmatmul.msk.bf16.vlgmr.msra.gmra.mxu1 %vm52_vm0, %v722_v5  ;;  %316 = vmatpush.bf16.msrb.mxu0 %v593_v16  ;;  %v585_v29 = vor.u32 %v737_v24, %v582_v26  ;;  %v736_v31 = vld [vmem:[%s1088_s3 + $0x54] sm:$0xf0]  ;;  %v636_v32 = vld [vmem:[%s1088_s3 + $0xd0] sm:$0xf] }
   0x9   :  { %330 = vmatpush.bf16.msrb.mxu1 %v657_v20  ;;  %v649_v33 = vor.u32 %v753_v27, %v646_v28  ;;  %v752_v34 = vld [vmem:[%s1088_s3 + $0xd4] sm:$0xf0]  ;;  %v735_v35 = vld [vmem:[%s1088_s3 + $0x54] sm:$0xf]  ;;  %v574_v36 = vld [vmem:[%s1088_s3 + $0x58] sm:$0xf0]  ;;  %v573_v37 = vor.u32 %v736_v31, %v572_v30 }
   0xa   :  { %289 = vmatpush.bf16.msra.mxu2 %v581_v21  ;;  %v637_v38 = vor.u32 %v752_v34, %v636_v32  ;;  %v751_v39 = vld [vmem:[%s1088_s3 + $0xd4] sm:$0xf]  ;;  %v638_v40 = vld [vmem:[%s1088_s3 + $0xd8] sm:$0xf0]  ;;  %v564_v41 = vld [vmem:[%s1088_s3 + $0x40] sm:$0xf]  ;;  %v577_v45 = vor.u32 %v735_v35, %v574_v36 }
   0xb   :  { %303 = vmatpush.bf16.msra.mxu3 %v645_v25  ;;  %v734_v42 = vld [vmem:[%s1088_s3 + $0x44] sm:$0xf0]  ;;  %v628_v43 = vld [vmem:[%s1088_s3 + $0xc0] sm:$0xf]  ;;  %v641_v46 = vor.u32 %v751_v39, %v638_v40  ;;  %v733_v47 = vld [vmem:[%s1088_s3 + $0x44] sm:$0xf] }
   0xc   :  { %v750_v44 = vld [vmem:[%s1088_s3 + $0xc4] sm:$0xf0]  ;;  %317 = vmatpush.bf16.msrb.mxu0 %v585_v29  ;;  %v566_v48 = vld [vmem:[%s1088_s3 + $0x48] sm:$0xf0]  ;;  %v565_v49 = vor.u32 %v734_v42, %v564_v41  ;;  %v749_v51 = vld [vmem:[%s1088_s3 + $0xc4] sm:$0xf] }
   0xd   :  { %331 = vmatpush.bf16.msrb.mxu1 %v649_v33  ;;  %v629_v50 = vor.u32 %v750_v44, %v628_v43  ;;  %v630_v52 = vld [vmem:[%s1088_s3 + $0xc8] sm:$0xf0]  ;;  %v569_v53 = vor.u32 %v733_v47, %v566_v48  ;;  %v556_v55 = vld [vmem:[%s1088_s3 + $0x30] sm:$0xf]  ;;  %v732_v56 = vld [vmem:[%s1088_s3 + $0x34] sm:$0xf0] }
   0xe   :  { %290 = vmatpush.bf16.msra.mxu2 %v573_v37  ;;  %v633_v54 = vor.u32 %v749_v51, %v630_v52  ;;  %v620_v57 = vld [vmem:[%s1088_s3 + $0xb0] sm:$0xf]  ;;  %v557_v58 = vor.u32 %v732_v56, %v556_v55  ;;  %v748_v59 = vld [vmem:[%s1088_s3 + $0xb4] sm:$0xf0]  ;;  %v731_v60 = vld [vmem:[%s1088_s3 + $0x34] sm:$0xf] }
   0xf   :  { %304 = vmatpush.bf16.msra.mxu3 %v637_v38  ;;  %v558_v61 = vld [vmem:[%s1088_s3 + $0x38] sm:$0xf0]  ;;  %v621_v62 = vor.u32 %v748_v59, %v620_v57  ;;  %v747_v0 = vld [vmem:[%s1088_s3 + $0xb4] sm:$0xf]  ;;  %v548_v3 = vld [vmem:[%s1088_s3 + $0x20] sm:$0xf] }
  0x10   :  { %318 = vmatpush.bf16.msrb.mxu0 %v577_v45  ;;  %v561_v63 = vor.u32 %v731_v60, %v558_v61  ;;  %v622_v1 = vld [vmem:[%s1088_s3 + $0xb8] sm:$0xf0]  ;;  %v730_v4 = vld [vmem:[%s1088_s3 + $0x24] sm:$0xf0]  ;;  %v612_v6 = vld [vmem:[%s1088_s3 + $0xa0] sm:$0xf] }
  0x11   :  { %332 = vmatpush.bf16.msrb.mxu1 %v641_v46  ;;  %v625_v2 = vor.u32 %v747_v0, %v622_v1  ;;  %v549_v5 = vor.u32 %v730_v4, %v548_v3  ;;  %v746_v7 = vld [vmem:[%s1088_s3 + $0xa4] sm:$0xf0]  ;;  %v729_v8 = vld [vmem:[%s1088_s3 + $0x24] sm:$0xf]  ;;  %v550_v10 = vld [vmem:[%s1088_s3 + $0x28] sm:$0xf0] }
  0x12   :  { %291 = vmatpush.bf16.msra.mxu2 %v565_v49  ;;  %v613_v9 = vor.u32 %v746_v7, %v612_v6  ;;  %v745_v11 = vld [vmem:[%s1088_s3 + $0xa4] sm:$0xf]  ;;  %v614_v12 = vld [vmem:[%s1088_s3 + $0xa8] sm:$0xf0]  ;;  %v553_v13 = vor.u32 %v729_v8, %v550_v10  ;;  %v540_v15 = vld [vmem:[%s1088_s3 + $0x10] sm:$0xf] }
  0x13   :  { %305 = vmatpush.bf16.msra.mxu3 %v629_v50  ;;  %v617_v14 = vor.u32 %v745_v11, %v614_v12  ;;  %v728_v16 = vld [vmem:[%s1088_s3 + $0x14] sm:$0xf0]  ;;  %v604_v17 = vld [vmem:[%s1088_s3 + $0x90] sm:$0xf]  ;;  %v727_v20 = vld [vmem:[%s1088_s3 + $0x14] sm:$0xf] }
  0x14   :  { %319 = vmatpush.bf16.msrb.mxu0 %v569_v53  ;;  %v541_v18 = vor.u32 %v728_v16, %v540_v15  ;;  %v744_v19 = vld [vmem:[%s1088_s3 + $0x94] sm:$0xf0]  ;;  %v542_v21 = vld [vmem:[%s1088_s3 + $0x18] sm:$0xf0]  ;;  %v743_v24 = vld [vmem:[%s1088_s3 + $0x94] sm:$0xf] }
  0x15   :  { %333 = vmatpush.bf16.msrb.mxu1 %v633_v54  ;;  %v605_v22 = vor.u32 %v744_v19, %v604_v17  ;;  %v545_v23 = vor.u32 %v727_v20, %v542_v21  ;;  %v606_v25 = vld [vmem:[%s1088_s3 + $0x98] sm:$0xf0]  ;;  %v532_v27 = vld [vmem:[%s1088_s3] sm:$0xf]  ;;  %v726_v28 = vld [vmem:[%s1088_s3 + $0x4] sm:$0xf0] }
  0x16   :  { %292 = vmatpush.bf16.msra.mxu2 %v557_v58  ;;  %v609_v26 = vor.u32 %v743_v24, %v606_v25  ;;  %v596_v29 = vld [vmem:[%s1088_s3 + $0x80] sm:$0xf]  ;;  %v533_v30 = vor.u32 %v726_v28, %v532_v27  ;;  %v742_v31 = vld [vmem:[%s1088_s3 + $0x84] sm:$0xf0]  ;;  %v725_v32 = vld [vmem:[%s1088_s3 + $0x4] sm:$0xf] }
  0x17   :  { %306 = vmatpush.bf16.msra.mxu3 %v621_v62  ;;  %v534_v33 = vld [vmem:[%s1088_s3 + $0x8] sm:$0xf0]  ;;  %v597_v34 = vor.u32 %v742_v31, %v596_v29  ;;  %v741_v36 = vld [vmem:[%s1088_s3 + $0x84] sm:$0xf]  ;;  %v772_v39 = vld [vmem:[%s1089_s5 + $0x78] sm:$0xff] }
  0x18   :  { %320 = vmatpush.bf16.msrb.mxu0 %v561_v63  ;;  %v537_v35 = vor.u32 %v725_v32, %v534_v33  ;;  %v598_v37 = vld [vmem:[%s1088_s3 + $0x88] sm:$0xf0]  ;;  %v764_v40 = vld [vmem:[%s1089_s5 + $0x38] sm:$0xff]  ;;  %v771_v41 = vld [vmem:[%s1089_s5 + $0x70] sm:$0xff] }
  0x19   :  { %334 = vmatpush.bf16.msrb.mxu1 %v625_v2  ;;  %v601_v38 = vor.u32 %v741_v36, %v598_v37  ;;  %v763_v42 = vld [vmem:[%s1089_s5 + $0x30] sm:$0xff]  ;;  %v770_v43 = vld [vmem:[%s1089_s5 + $0x68] sm:$0xff]  ;;  %v769_v44 = vld [vmem:[%s1089_s5 + $0x60] sm:$0xff] }
  0x1a   :  { %293 = vmatpush.bf16.msra.mxu2 %v549_v5  ;;  %v31_v45 = vld [vmem:[%s1090_s2] sm:$0x3]  ;;  %v762_v62 = vld [vmem:[%s1089_s5 + $0x28] sm:$0xff]  ;;  %v768_v63 = vld [vmem:[%s1089_s5 + $0x58] sm:$0xff] }
  0x1b   :  { %307 = vmatpush.bf16.msra.mxu3 %v613_v9  ;;  %v33_v48 = vperm.slane %v31_v45, 0  ;;  %v34_v49 = vperm.slane %v31_v45, 1  ;;  %v761_v0 = vld [vmem:[%s1089_s5 + $0x20] sm:$0xff]  ;;  %v767_v1 = vld [vmem:[%s1089_s5 + $0x50] sm:$0xff]  ;;  %v760_v2 = vld [vmem:[%s1089_s5 + $0x18] sm:$0xff] }
  0x1c   :  { %321 = vmatpush.bf16.msrb.mxu0 %v553_v13  ;;  %v766_v3 = vld [vmem:[%s1089_s5 + $0x48] sm:$0xff]  ;;  %v759_v4 = vld [vmem:[%s1089_s5 + $0x10] sm:$0xff]  ;;  %v765_v5 = vld [vmem:[%s1089_s5 + $0x40] sm:$0xff] }
  0x1d   :  { %335 = vmatpush.bf16.msrb.mxu1 %v617_v14  ;;  %v758_v6 = vld [vmem:[%s1089_s5 + $0x8] sm:$0xff]  ;;  %v757_v7 = vld [vmem:[%s1089_s5] sm:$0xff] }
  0x1e   :  { %294 = vmatpush.bf16.msra.mxu2 %v541_v18  ;;  %v122_v8 = vld [vmem:[%s1091_s4] sm:$0x3] }
  0x1f   :  { %308 = vmatpush.bf16.msra.mxu3 %v605_v22  ;;  %v125_v10 = vperm.slane %v122_v8, 1  ;;  %v124_v14 = vperm.slane %v122_v8, 0  ;;  %v773_v33 = vld [vmem:[%s1092_s6] ss:$0 sm:$0xff] }
  0x20   :  { %322 = vmatpush.bf16.msrb.mxu0 %v545_v23 }
  0x21   :  { %336 = vmatpush.bf16.msrb.mxu1 %v609_v26 }
  0x22   :  { %295 = vmatpush.bf16.msra.mxu2 %v533_v30 }
  0x23   :  { %309 = vmatpush.bf16.msra.mxu3 %v597_v34 }
  0x24   :  { %323 = vmatpush.bf16.msrb.mxu0 %v537_v35 }
  0x25   :  { %337 = vmatpush.bf16.msrb.mxu1 %v601_v38 }
  0x26   :  { %482 = vmatpush.bf16.msrb.mxu2 %v764_v40 }
  0x27   :  { %496 = vmatpush.bf16.msrb.mxu3 %v772_v39 }
  0x2a   :  { %483 = vmatpush.bf16.msrb.mxu2 %v763_v42 }
  0x2b   :  { %497 = vmatpush.bf16.msrb.mxu3 %v771_v41 }
  0x2e   :  { %484 = vmatpush.bf16.msrb.mxu2 %v762_v62 }
  0x2f   :  { %498 = vmatpush.bf16.msrb.mxu3 %v770_v43 }
  0x32   :  { %485 = vmatpush.bf16.msrb.mxu2 %v761_v0 }
  0x33   :  { %499 = vmatpush.bf16.msrb.mxu3 %v769_v44 }
  0x36   :  { %486 = vmatpush.bf16.msrb.mxu2 %v760_v2 }
  0x37   :  { %500 = vmatpush.bf16.msrb.mxu3 %v768_v63 }
  0x3a   :  { %487 = vmatpush.bf16.msrb.mxu2 %v759_v4 }
  0x3b   :  { %501 = vmatpush.bf16.msrb.mxu3 %v767_v1 }
  0x3e   :  { %488 = vmatpush.bf16.msrb.mxu2 %v758_v6 }
  0x3f   :  { %502 = vmatpush.bf16.msrb.mxu3 %v766_v3 }
  0x42   :  { %489 = vmatpush.bf16.msrb.mxu2 %v757_v7 }
  0x43   :  { %503 = vmatpush.bf16.msrb.mxu3 %v765_v5 }
  0x84   :  { %v65_v46 = vpop.f32.mrf.mxu0 }
  0x85   :  { %v79_v47 = vpop.f32.mrf.mxu1  ;;  %v66_v50 = vadd.f32 %v65_v46, %v33_v48 }
  0x86   :  { %v80_v51 = vadd.f32 %v79_v47, %v34_v49 }
  0x87   :  { %v84_v56 = vmax.f32 %v66_v50, 0.0 }
  0x88   :  { %v85_v58 = vmax.f32 %v80_v51, 0.0 }
  0x8c   :  { %v67_v52 = vpop.f32.mrf.mxu0 }
  0x8d   :  { %v68_v53 = vadd.f32 %v67_v52, %v33_v48  ;;  %v81_v54 = vpop.f32.mrf.mxu1 }
  0x8e   :  { %v82_v55 = vadd.f32 %v81_v54, %v34_v49 }
  0x8f   :  { %v86_v57 = vmax.f32 %v68_v53, 0.0 }
  0x90   :  { %v87_v59 = vmax.f32 %v82_v55, 0.0 }
  0x91   :  { %v88_v60 = vpack.c.bf16 %v86_v57, %v84_v56 }
  0x92   :  { %v89_v61 = vpack.c.bf16 %v87_v59, %v85_v58 }
  0x93   :  { %296 = vmatmul.bf16.vlgmr.msra.gmra.mxu2 %v88_v60  ;;  %324 = vmatmul.bf16.vlgmr.msrb.gmra.mxu0 %v88_v60 }
  0x94   :  { %310 = vmatmul.bf16.vlgmr.msra.gmra.mxu3 %v89_v61  ;;  %338 = vmatmul.bf16.vlgmr.msrb.gmra.mxu1 %v89_v61 }
 0x110   :  { %v325_v9 = vpop.f32.mrf.mxu0 }
 0x111   :  { %v339_v11 = vpop.f32.mrf.mxu1  ;;  %v326_v12 = vadd.f32 %v325_v9, %v125_v10 }
 0x113   :  { %v340_v17 = vadd.f32 %v339_v11, %v326_v12 }
 0x115   :  { %v345_v22 = vmax.f32 %v340_v17, 0.0 }
 0x116   :  { %v297_v13 = vpop.f32.mrf.mxu2 }
 0x117   :  { %v311_v15 = vpop.f32.mrf.mxu3  ;;  %v298_v20 = vadd.f32 %v297_v13, %v124_v14 }
 0x118   :  { %v327_v16 = vpop.f32.mrf.mxu0 }
 0x119   :  { %v328_v18 = vadd.f32 %v327_v16, %v125_v10  ;;  %v341_v19 = vpop.f32.mrf.mxu1  ;;  %v312_v25 = vadd.f32 %v311_v15, %v298_v20 }
 0x11b   :  { %v342_v21 = vadd.f32 %v341_v19, %v328_v18  ;;  %v344_v30 = vmax.f32 %v312_v25, 0.0 }
 0x11d   :  { %v347_v23 = vmax.f32 %v342_v21, 0.0 }
 0x11e   :  { %v299_v24 = vpop.f32.mrf.mxu2 }
 0x11f   :  { %v349_v26 = vpack.c.bf16 %v347_v23, %v345_v22  ;;  %v300_v27 = vadd.f32 %v299_v24, %v124_v14  ;;  %v313_v28 = vpop.f32.mrf.mxu3 }
 0x121   :  { %v314_v29 = vadd.f32 %v313_v28, %v300_v27  ;;  %504 = vmatmul.bf16.vlgmr.msrb.gmra.mxu3 %v349_v26 }
 0x123   :  { %v346_v31 = vmax.f32 %v314_v29, 0.0 }
 0x125   :  { %v348_v32 = vpack.c.bf16 %v346_v31, %v344_v30 }
 0x127   :  { %490 = vmatmul.bf16.vlgmr.msrb.gmra.mxu2 %v348_v32 }
 0x1a4   :  { %v505_v34 = vpop.f32.mrf.mxu3 }
 0x1aa   :  { %v491_v35 = vpop.f32.mrf.mxu2 }
 0x1ab   :  { %v492_v36 = vadd.f32 %v773_v33, %v491_v35 }
 0x1ac   :  { %v507_v40 = vpop.f32.mrf.mxu3 }
 0x1ad   :  { %v506_v37 = vadd.f32 %v505_v34, %v492_v36 }
 0x1af   :  { %510 = vst [vmem:[%s1093_s7] sm:$0xff] %v506_v37 }
 0x1b2   :  { %v493_v38 = vpop.f32.mrf.mxu2 }
 0x1b3   :  { %v494_v39 = vadd.f32 %v773_v33, %v493_v38 }
 0x1b5   :  { %v508_v41 = vadd.f32 %v507_v40, %v494_v39 }
 0x1b7   :  { %511 = vst [vmem:[%s1093_s7 + $0x8] sm:$0xff] %v508_v41 }

</bundles_post_ra>
